<compile_context>
chip_gen: v7x
topology: tpu7x:2x2x1
jax: 0.10.0
libtpu: 0.0.40
codegen_flags: <defaults>
</compile_context>

<pallas_src>
import jax
import jax.numpy as jnp
import numpy as np
from jax.experimental import pallas as pl
from jax.experimental.pallas import tpu as pltpu

_EPS = 1e-8                              # torch F.cosine_similarity default eps
_R_MAX = float(1.0 / np.sqrt(_EPS))      # per-norm reciprocal clamp (1e4)


def _pix_consist_kernel(x1_ref, x2_ref, mask_ref, sum_ref, cnt_ref):
    # x1_ref  : (1, TM, C)  bf16  row tile of image b (pixel-major)
    # x2_ref  : (1, C, TN)  bf16  column tile of image b (channel-major)
    # mask_ref: (1, TM, TN) bool  mask tile
    # sum_ref : (1, 1, 128) f32   per-(image,row-tile) masked-sim accumulator
    # cnt_ref : (1, 1, 128) i32   per-(image,row-tile) match-count accumulator
    j = pl.program_id(2)

    @pl.when(j == 0)
    def _():
        sum_ref[...] = jnp.zeros_like(sum_ref)
        cnt_ref[...] = jnp.zeros_like(cnt_ref)

    x1 = x1_ref[0].astype(jnp.float32)            # (TM, C)
    x2 = x2_ref[0].astype(jnp.float32)            # (C, TN)
    m = mask_ref[0]                               # (TM, TN) bool

    # Pre-normalize so the matmul output is already the cosine similarity.
    # r = min(rsqrt(||x||^2), 1/sqrt(eps)); zero-norm (padding) pixels -> 0.
    r1 = jnp.minimum(jax.lax.rsqrt(jnp.sum(x1 * x1, axis=1, keepdims=True)),
                     jnp.float32(_R_MAX))         # (TM, 1)
    r2 = jnp.minimum(jax.lax.rsqrt(jnp.sum(x2 * x2, axis=0, keepdims=True)),
                     jnp.float32(_R_MAX))         # (1, TN)
    x1n = (x1 * r1).astype(jnp.bfloat16)
    x2n = (x2 * r2).astype(jnp.bfloat16)

    # cos[p, q] = <x1n[p, :], x2n[:, q]>  -> MXU (K = C), f32 accumulate.
    cos = jnp.dot(x1n, x2n, preferred_element_type=jnp.float32)   # (TM, TN)

    mf = jnp.where(m, jnp.float32(1.0), jnp.float32(0.0))
    tile_sum = jnp.sum(cos * mf)                  # scalar f32
    tile_cnt = jnp.sum(mf)                        # scalar f32, exact (TM*TN < 2^24)

    # Lane-dense accumulation (consumer reads [:, 0, 0]).
    sum_ref[...] += jnp.broadcast_to(tile_sum, sum_ref.shape)
    cnt_ref[...] += jnp.broadcast_to(tile_cnt, cnt_ref.shape).astype(jnp.int32)


def _round_up(x, m):
    return ((x + m - 1) // m) * m


def _pick_tile(n_padded, candidates):
    for c in candidates:
        if n_padded % c == 0:
            return c
    return 128   # n_padded is always a multiple of 128


def pix_consist_loss(x1, x2, mask, *, tm=None, tn=None):
    """x1, x2: (B, C, H, W) float; mask: (B, H*W, H*W) bool. Returns scalar."""
    B, C, H, W = x1.shape
    N = H * W

    # Tile sizes: rows (x1 pixels) x cols (x2 pixels) of the N x N plane.
    if tm is None:
        tm = _pick_tile(_round_up(N, 128), (512, 256, 128))
    if tn is None:
        tn = _pick_tile(_round_up(N, 128), (1024, 512, 256, 128))
    assert tm % 32 == 0 and tn % 128 == 0, "tm must be a multiple of 32, tn of 128"

    nr = _round_up(N, tm)          # padded row extent
    nc = _round_up(N, tn)          # padded col extent
    ni, nj = nr // tm, nc // tn

    # x1 -> (B, N, C) pixel-major rows (bf16); x2 stays channel-major (B, C, N).
    # The x1 transpose+cast is one O(B*N*C) wrapper pass; negligible vs the
    # B*N^2 mask stream for C << N and keeps the in-kernel matmul un-transposed.
    x1f = jnp.transpose(x1.reshape(B, C, N).astype(jnp.bfloat16), (0, 2, 1))
    x2f = x2.reshape(B, C, N).astype(jnp.bfloat16)
    maskb = mask if mask.dtype == jnp.bool_ else (mask != 0)   # bool, 1 byte/elem

    # Zero-pad awkward N up to the tile grid (padded pixels contribute nothing).
    if nr > N:
        x1f = jnp.pad(x1f, ((0, 0), (0, nr - N), (0, 0)))
    if nc > N:
        x2f = jnp.pad(x2f, ((0, 0), (0, 0), (0, nc - N)))
    if nr > N or nc > N:
        maskb = jnp.pad(maskb, ((0, 0), (0, nr - N), (0, nc - N)))

    grid = (B, ni, nj)

    # VMEM budget: double-buffered inputs + f32 (TM,TN) temporaries; capped at
    # 48 MiB so the same config fits v7x's 64 MiB per-TensorCore VMEM.
    x_blk = tm * C + C * tn
    vmem_est = 2 * 2 * x_blk + 3 * 4 * x_blk + 2 * tm * tn + 8 * 4 * tm * tn + (2 << 20)
    vmem_limit = int(min(max(vmem_est, 32 << 20), 48 << 20))

    cost = pl.CostEstimate(
        flops=2 * B * nr * nc * C + 4 * B * nr * nc,
        transcendentals=B * (nr * nj + nc * ni),
        bytes_accessed=B * nr * nc + 2 * B * C * (nr + nc * ni) + 8 * B * ni * 128,
    )

    sums, cnts = pl.pallas_call(
        _pix_consist_kernel,
        out_shape=(
            jax.ShapeDtypeStruct((B * ni, 1, 128), jnp.float32),
            jax.ShapeDtypeStruct((B * ni, 1, 128), jnp.int32),
        ),
        grid_spec=pltpu.PrefetchScalarGridSpec(
            num_scalar_prefetch=0,
            grid=grid,
            in_specs=[
                pl.BlockSpec((1, tm, C), lambda b, i, j: (b, i, 0)),
                pl.BlockSpec((1, C, tn), lambda b, i, j: (b, 0, j)),
                pl.BlockSpec((1, tm, tn), lambda b, i, j: (b, i, j)),
            ],
            out_specs=[
                pl.BlockSpec((1, 1, 128), lambda b, i, j: (b * ni + i, 0, 0)),
                pl.BlockSpec((1, 1, 128), lambda b, i, j: (b * ni + i, 0, 0)),
            ],
        ),
        compiler_params=pltpu.CompilerParams(
            dimension_semantics=("parallel", "parallel", "arbitrary"),
            vmem_limit_bytes=vmem_limit,
        ),
        cost_estimate=cost,
    )(x1f, x2f, maskb)

    per_image_sum = sums[:, 0, 0].reshape(B, ni).sum(axis=1)                    # (B,)
    matches_per_image = cnts[:, 0, 0].reshape(B, ni).sum(axis=1).astype(jnp.float32)

    # masked_select(matches > 0) + mean, without dynamic shapes.
    valid = matches_per_image > 0
    per_image = jnp.where(valid, per_image_sum / jnp.maximum(matches_per_image, 1.0), 0.0)
    n_valid = jnp.sum(valid.astype(jnp.float32))
    mean = jnp.sum(per_image) / n_valid   # NaN if no valid image (matches torch)
    return 1.0 - mean


def _reference(x1, x2, mask):
    """Pure-JAX f32 reference mirroring the PyTorch forward."""
    B, C, H, W = x1.shape
    N = H * W
    a = x1.reshape(B, C, N).astype(jnp.float32)
    b = x2.reshape(B, C, N).astype(jnp.float32)
    dot = jnp.einsum("bci,bcj->bij", a, b)
    n1 = jnp.sqrt(jnp.sum(a * a, axis=1))  # (B, N)
    n2 = jnp.sqrt(jnp.sum(b * b, axis=1))
    s = dot / jnp.maximum(n1[:, :, None] * n2[:, None, :], _EPS)
    res = jnp.where(mask, s, 0.0).sum(axis=(-1, -2))
    mpi = mask.sum(axis=(-1, -2)).astype(jnp.float32)
    valid = mpi > 0
    per = jnp.where(valid, res / jnp.maximum(mpi, 1.0), 0.0)
    return 1.0 - jnp.sum(per) / jnp.sum(valid.astype(jnp.float32))


if __name__ == "__main__":
    key = jax.random.PRNGKey(0)
    k1, k2, k3, k4, k5, k6 = jax.random.split(key, 6)

    # Case 1: B=2, C=4, 16x16 -> N=256. Forced 128x128 tiles give grid (2,2,2)
    # and exercise the multi-tile (per-row-partial) accumulation path.
    B, C, H, W = 2, 4, 16, 16
    N = H * W
    x1 = jax.random.normal(k1, (B, C, H, W), dtype=jnp.float32)
    x2 = jax.random.normal(k2, (B, C, H, W), dtype=jnp.float32)
    mask = jax.random.uniform(k3, (B, N, N)) > 0.5

    out = jax.block_until_ready(pix_consist_loss(x1, x2, mask, tm=128, tn=128))
    ref = _reference(x1, x2, mask)
    np.testing.assert_allclose(np.asarray(out), np.asarray(ref), rtol=2e-3, atol=2e-3)

    # Default tile selection at the same shape (single tile per image).
    out_d = jax.block_until_ready(pix_consist_loss(x1, x2, mask))
    np.testing.assert_allclose(np.asarray(out_d), np.asarray(ref), rtol=2e-3, atol=2e-3)

    # Case 2: awkward N (6x6 -> N=36) exercises the zero-padding path.
    B2, C2, H2, W2 = 1, 3, 6, 6
    N2 = H2 * W2
    y1 = jax.random.normal(k4, (B2, C2, H2, W2), dtype=jnp.float32)
    y2 = jax.random.normal(k5, (B2, C2, H2, W2), dtype=jnp.float32)
    mask2 = jax.random.uniform(k6, (B2, N2, N2)) > 0.5

    out2 = jax.block_until_ready(pix_consist_loss(y1, y2, mask2))
    ref2 = _reference(y1, y2, mask2)
    np.testing.assert_allclose(np.asarray(out2), np.asarray(ref2), rtol=2e-3, atol=2e-3)

    print("KERNEL_OK")
</pallas_src>

<mosaic_0001>
module attributes {stable_mosaic.version = 11 : i64} {
  func.func @_pix_consist_kernel(%arg0: i32, %arg1: i32, %arg2: i32, %arg3: memref<1x128x4xbf16, #tpu.memory_space<vmem>>, %arg4: memref<1x4x128xbf16, #tpu.memory_space<vmem>>, %arg5: memref<1x128x128xi32, #tpu.memory_space<vmem>>, %arg6: memref<1x1x128xf32, #tpu.memory_space<vmem>>, %arg7: memref<1x1x128xi32, #tpu.memory_space<vmem>>) attributes {dimension_semantics = [#tpu.dimension_semantics<parallel>, #tpu.dimension_semantics<parallel>, #tpu.dimension_semantics<arbitrary>], iteration_bounds = array<i64: 2, 2, 2>, scalar_prefetch = 0 : i64, scratch_operands = 0 : i64, tpu.core_type = #tpu.core_type<tc>, window_params = [{transform_indices = @transform_0, window_bounds = array<i64: 1, 128, 4>}, {transform_indices = @transform_1, window_bounds = array<i64: 1, 4, 128>}, {transform_indices = @transform_2, window_bounds = array<i64: 1, 128, 128>}, {transform_indices = @transform_3, window_bounds = array<i64: 1, 1, 128>}, {transform_indices = @transform_4, window_bounds = array<i64: 1, 1, 128>}]} {
    %c0_i32 = arith.constant 0 : i32
    %0 = arith.cmpi eq, %arg2, %c0_i32 : i32
    %1 = arith.extui %0 : i1 to i32
    %c0_i32_0 = arith.constant 0 : i32
    %2 = arith.cmpi ne, %1, %c0_i32_0 : i32
    scf.if %2 {
      %cst_30 = arith.constant 0.000000e+00 : f32
      %52 = vector.broadcast %cst_30 : f32 to vector<1x1x128xf32>
      %c0_31 = arith.constant 0 : index
      %c0_32 = arith.constant 0 : index
      %c0_33 = arith.constant 0 : index
      %53 = vector.load %arg6[%c0_31, %c0_32, %c0_33] : memref<1x1x128xf32, #tpu.memory_space<vmem>>, vector<1x1x128xf32>
      tpu.vector_store %arg6[%c0_31, %c0_32, %c0_33], %52 {strides = array<i32>} : memref<1x1x128xf32, #tpu.memory_space<vmem>>, vector<1x1x128xf32>,
      %c0_i32_34 = arith.constant 0 : i32
      %54 = vector.broadcast %c0_i32_34 : i32 to vector<1x1x128xi32>
      %c0_35 = arith.constant 0 : index
      %c0_36 = arith.constant 0 : index
      %c0_37 = arith.constant 0 : index
      %55 = vector.load %arg7[%c0_35, %c0_36, %c0_37] : memref<1x1x128xi32, #tpu.memory_space<vmem>>, vector<1x1x128xi32>
      tpu.vector_store %arg7[%c0_35, %c0_36, %c0_37], %54 {strides = array<i32>} : memref<1x1x128xi32, #tpu.memory_space<vmem>>, vector<1x1x128xi32>,
    } else {
    }
    %c0 = arith.constant 0 : index
    %c0_1 = arith.constant 0 : index
    %c0_2 = arith.constant 0 : index
    %3 = vector.load %arg3[%c0, %c0_1, %c0_2] : memref<1x128x4xbf16, #tpu.memory_space<vmem>>, vector<1x128x4xbf16>
    %4 = vector.shape_cast %3 : vector<1x128x4xbf16> to vector<128x4xbf16>
    %5 = arith.extf %4 : vector<128x4xbf16> to vector<128x4xf32>
    %c0_3 = arith.constant 0 : index
    %c0_4 = arith.constant 0 : index
    %c0_5 = arith.constant 0 : index
    %6 = vector.load %arg4[%c0_3, %c0_4, %c0_5] : memref<1x4x128xbf16, #tpu.memory_space<vmem>>, vector<1x4x128xbf16>
    %7 = vector.shape_cast %6 : vector<1x4x128xbf16> to vector<4x128xbf16>
    %8 = arith.extf %7 : vector<4x128xbf16> to vector<4x128xf32>
    %c0_6 = arith.constant 0 : index
    %c0_7 = arith.constant 0 : index
    %c0_8 = arith.constant 0 : index
    %9 = vector.load %arg5[%c0_6, %c0_7, %c0_8] : memref<1x128x128xi32, #tpu.memory_space<vmem>>, vector<1x128x128xi32>
    %10 = vector.shape_cast %9 : vector<1x128x128xi32> to vector<128x128xi32>
    %cst = arith.constant dense<0> : vector<128x128xi32>
    %11 = arith.cmpi ne, %10, %cst : vector<128x128xi32>
    %12 = arith.mulf %5, %5 : vector<128x4xf32>
    %cst_9 = arith.constant dense<0.000000e+00> : vector<128xf32>
    %13 = vector.multi_reduction <add>, %12, %cst_9 [1] : vector<128x4xf32> to vector<128xf32>
    %14 = vector.shape_cast %13 : vector<128xf32> to vector<128x1xf32>
    %15 = math.rsqrt %14 : vector<128x1xf32>
    %cst_10 = arith.constant 1.000000e+04 : f32
    %16 = vector.broadcast %cst_10 : f32 to vector<128x1xf32>
    %17 = arith.minimumf %15, %16 : vector<128x1xf32>
    %18 = arith.mulf %8, %8 : vector<4x128xf32>
    %cst_11 = arith.constant dense<0.000000e+00> : vector<128xf32>
    %19 = vector.multi_reduction <add>, %18, %cst_11 [0] : vector<4x128xf32> to vector<128xf32>
    %20 = vector.shape_cast %19 : vector<128xf32> to vector<1x128xf32>
    %21 = math.rsqrt %20 : vector<1x128xf32>
    %cst_12 = arith.constant 1.000000e+04 : f32
    %22 = vector.broadcast %cst_12 : f32 to vector<1x128xf32>
    %23 = arith.minimumf %21, %22 : vector<1x128xf32>
    %24 = vector.broadcast %17 : vector<128x1xf32> to vector<128x4xf32>
    %25 = arith.mulf %5, %24 : vector<128x4xf32>
    %26 = arith.truncf %25 : vector<128x4xf32> to vector<128x4xbf16>
    %27 = vector.broadcast %23 : vector<1x128xf32> to vector<4x128xf32>
    %28 = arith.mulf %8, %27 : vector<4x128xf32>
    %29 = arith.truncf %28 : vector<4x128xf32> to vector<4x128xbf16>
    %cst_13 = arith.constant dense<0.000000e+00> : vector<128x128xf32>
    %30 = tpu.matmul %26, %29, %cst_13 {dimension_numbers = #tpu.dot_dimension_numbers<[1], [0], [0], [1], [0, 0, 1, 1], [], []>} : vector<128x4xbf16>, vector<4x128xbf16>, vector<128x128xf32> -> vector<128x128xf32>
    %cst_14 = arith.constant 1.000000e+00 : f32
    %cst_15 = arith.constant 0.000000e+00 : f32
    %31 = vector.broadcast %cst_14 : f32 to vector<128x128xf32>
    %32 = vector.broadcast %cst_15 : f32 to vector<128x128xf32>
    %33 = arith.select %11, %31, %32 : vector<128x128xi1>, vector<128x128xf32>
    %34 = arith.mulf %30, %33 : vector<128x128xf32>
    %35 = vector.shape_cast %34 : vector<128x128xf32> to vector<1x128x128xf32>
    %cst_16 = arith.constant dense<0.000000e+00> : vector<1xf32>
    %36 = vector.multi_reduction <add>, %35, %cst_16 [1, 2] : vector<1x128x128xf32> to vector<1xf32>
    %37 = vector.shape_cast %36 : vector<1xf32> to vector<1x1x1xf32>
    %38 = vector.extract %37[0, 0, 0] : f32 from vector<1x1x1xf32>
    %39 = vector.shape_cast %33 : vector<128x128xf32> to vector<1x128x128xf32>
    %cst_17 = arith.constant dense<0.000000e+00> : vector<1xf32>
    %40 = vector.multi_reduction <add>, %39, %cst_17 [1, 2] : vector<1x128x128xf32> to vector<1xf32>
    %41 = vector.shape_cast %40 : vector<1xf32> to vector<1x1x1xf32>
    %42 = vector.extract %41[0, 0, 0] : f32 from vector<1x1x1xf32>
    %c0_18 = arith.constant 0 : index
    %c0_19 = arith.constant 0 : index
    %c0_20 = arith.constant 0 : index
    %43 = vector.load %arg6[%c0_18, %c0_19, %c0_20] : memref<1x1x128xf32, #tpu.memory_space<vmem>>, vector<1x1x128xf32>
    %44 = vector.broadcast %38 : f32 to vector<1x1x128xf32>
    %45 = arith.addf %43, %44 : vector<1x1x128xf32>
    %c0_21 = arith.constant 0 : index
    %c0_22 = arith.constant 0 : index
    %c0_23 = arith.constant 0 : index
    %46 = vector.load %arg6[%c0_21, %c0_22, %c0_23] : memref<1x1x128xf32, #tpu.memory_space<vmem>>, vector<1x1x128xf32>
    tpu.vector_store %arg6[%c0_21, %c0_22, %c0_23], %45 {strides = array<i32>} : memref<1x1x128xf32, #tpu.memory_space<vmem>>, vector<1x1x128xf32>,
    %c0_24 = arith.constant 0 : index
    %c0_25 = arith.constant 0 : index
    %c0_26 = arith.constant 0 : index
    %47 = vector.load %arg7[%c0_24, %c0_25, %c0_26] : memref<1x1x128xi32, #tpu.memory_space<vmem>>, vector<1x1x128xi32>
    %48 = vector.broadcast %42 : f32 to vector<1x1x128xf32>
    %49 = arith.fptosi %48 : vector<1x1x128xf32> to vector<1x1x128xi32>
    %50 = arith.addi %47, %49 : vector<1x1x128xi32>
    %c0_27 = arith.constant 0 : index
    %c0_28 = arith.constant 0 : index
    %c0_29 = arith.constant 0 : index
    %51 = vector.load %arg7[%c0_27, %c0_28, %c0_29] : memref<1x1x128xi32, #tpu.memory_space<vmem>>, vector<1x1x128xi32>
    tpu.vector_store %arg7[%c0_27, %c0_28, %c0_29], %50 {strides = array<i32>} : memref<1x1x128xi32, #tpu.memory_space<vmem>>, vector<1x1x128xi32>,
    return
  }
  func.func @transform_0(%arg0: i32, %arg1: i32, %arg2: i32) -> (i32, i32, i32) {
    %c0_i32 = arith.constant 0 : i32
    %c0_i32_0 = arith.constant 0 : i32
    return %arg0, %arg1, %c0_i32 : i32, i32, i32
  }
  func.func @transform_1(%arg0: i32, %arg1: i32, %arg2: i32) -> (i32, i32, i32) {
    %c0_i32 = arith.constant 0 : i32
    %c0_i32_0 = arith.constant 0 : i32
    return %arg0, %c0_i32, %arg2 : i32, i32, i32
  }
  func.func @transform_2(%arg0: i32, %arg1: i32, %arg2: i32) -> (i32, i32, i32) {
    %c0_i32 = arith.constant 0 : i32
    return %arg0, %arg1, %arg2 : i32, i32, i32
  }
  func.func @transform_3(%arg0: i32, %arg1: i32, %arg2: i32) -> (i32, i32, i32) {
    %c2_i32 = arith.constant 2 : i32
    %0 = arith.muli %arg0, %c2_i32 : i32
    %1 = arith.addi %0, %arg1 : i32
    %c0_i32 = arith.constant 0 : i32
    %c0_i32_0 = arith.constant 0 : i32
    %c0_i32_1 = arith.constant 0 : i32
    return %1, %c0_i32, %c0_i32_0 : i32, i32, i32
  }
  func.func @transform_4(%arg0: i32, %arg1: i32, %arg2: i32) -> (i32, i32, i32) {
    %c2_i32 = arith.constant 2 : i32
    %0 = arith.muli %arg0, %c2_i32 : i32
    %1 = arith.addi %0, %arg1 : i32
    %c0_i32 = arith.constant 0 : i32
    %c0_i32_0 = arith.constant 0 : i32
    %c0_i32_1 = arith.constant 0 : i32
    return %1, %c0_i32, %c0_i32_0 : i32, i32, i32
  }
}

</mosaic_0001>

<bundles_post_ra>
// kernel: tpu_custom_call.1
= control target key start
LH: loop header
LB: loop body
LE: loop exit
PB: predicated region body
PF: predicated region fallthrough
CT: control target
= control target key end

     0   :  { %s1875_s0 = inlined_call_operand.vmem [shape: bf16[2,256,4], index: 0, kind: input, shape index: {}]   ;;  %s1876_s1 = inlined_call_operand.vmem [shape: bf16[2,4,256], index: 1, kind: input, shape index: {}]   ;;  %s1877_s2 = inlined_call_operand.vmem [shape: s32[2,256,256], index: 2, kind: input, shape index: {}]   ;;  %s1878_s3 = inlined_call_operand.hbm [shape: f32[4,1,128], index: 3, kind: output, shape index: {0}]   ;;  %s1879_s4 = inlined_call_operand.hbm [shape: s32[4,1,128], index: 4, kind: output, shape index: {1}]  }
   0x1   :  { %1889 = sst [smem:[#allocation17_spill]] %s1875_s0 }
   0x2   :  { %1890 = sst [smem:[#allocation18_spill]] %s1876_s1 }
   0x3   :  { %1891 = sst [smem:[#allocation19_spill]] %s1877_s2 }
   0x4   :  { %1892 = sst [smem:[#allocation20_spill]] %s1878_s3 }
   0x5   :  { %1893 = sst [smem:[#allocation21_spill]] %s1879_s4 }
   0x6   :  { %10 = vsyncpa [#allocation4], 0 }
   0x7   :  { %12 = vsyncpa [#allocation4 + $0x1], 0 }
   0x8   :  { %13 = vsyncpa [#allocation6], 0 }
   0x9   :  { %15 = vsyncpa [#allocation6 + $0x1], 0  ;;  %s1459_s15 = smov 0   ;;  %s1461_s16 = smov 0  }
   0xa   :  { %s1463_s17 = smov 0   ;;  %s1465_s18 = smov 0  }
   0xb   :  { %s1467_s19 = smov 0   ;;  %s1469_s20 = smov 0  }
   0xc   :  { %s1471_s21 = smov 0   ;;  %s1473_s22 = smov 0  }
   0xd   :  { %s1475_s23 = smov 0   ;;  %s1477_s24 = smov 0  }
   0xe   :  { %s1479_s25 = smov 0   ;;  %s1481_s26 = smov 0  }
   0xf LB: > { %1894 = sst [smem:[#allocation9_spill]] %s1383_s15  ;;  %s1012_s27 = sadd.s32 4294967295, %s1427_s26   ;;  %s1427_s26 = sphi %s1481_s26, %s21_s26   ;;  %s1423_s25 = sphi %s1479_s25, %s1918_s25   ;;  %s1419_s24 = sphi %s1477_s24, %s1917_s24   ;;  %s1415_s23 = sphi %s1475_s23, %s1916_s23   ;;  %s1411_s22 = sphi %s1473_s22, %s1915_s22   ;;  %s1407_s21 = sphi %s1471_s21, %s1914_s21   ;;  %s1403_s20 = sphi %s1469_s20, %s1913_s20   ;;  %s1399_s19 = sphi %s1467_s19, %s1923_s19   ;;  %s1395_s18 = sphi %s1465_s18, %s1922_s18   ;;  %s1391_s17 = sphi %s1463_s17, %s1921_s17   ;;  %s1387_s16 = sphi %s1461_s16, %s1920_s16   ;;  %s1383_s15 = sphi %s1459_s15, %s1919_s15  }
  0x10   : > { %1895 = sst [smem:[#allocation10_spill]] %s1415_s23  ;;  %s1013_s28 = sadd.s32 4294967294, %s1427_s26  }
  0x11   : > { %1896 = sst [smem:[#allocation11_spill]] %s1419_s24  ;;  %s33_s29 = sadd.s32 1, %s1415_s23 }
  0x12   : > { %1897 = sst [smem:[#allocation12_spill]] %s1423_s25  ;;  %s36_s30 = sadd.s32 1, %s1419_s24 }
  0x13   : > { %p34_p0 = scmp.ge.s32.totalorder %s33_s29, 2  ;;  %s40_s5 = sadd.s32 1, %s1423_s25 }
  0x14   : > { %p114_p1 = scmp.ne.s32.totalorder %s1399_s19, %s1395_s18  ;;  %p115_p2 = scmp.eq.s32.totalorder %s1427_s26, 0 }
  0x15   : > { %s1925_s29 = smov (%p34_p0, %s33_s29), 0  ;;  %s1927_s30 = smov (!%p34_p0, %s36_s30), %s1419_s24 }
  0x16   : > { %1898 = sst [smem:[#allocation13_spill]] %s1925_s29  ;;  %s103_s7 = ssub.s32 %s1415_s23, %s1925_s29 }
  0x17   : > { %p38_p3 = scmp.ge.s32.totalorder %s1927_s30, 2  ;;  %s1014_s8 = sshll.u32 %s1423_s25, 1 }
  0x18   : > { %p1534_p4 = por %p115_p2, %p114_p1  ;;  %s131_s10 = sadd.s32 %s1419_s24, %s1014_s8 }
  0x19   : > { %s1929_s30 = smov (%p38_p3, %s1927_s30), 0  ;;  %s1931_s5 = smov (!%p38_p3, %s40_s5), %s1423_s25 }
  0x1a   : > { %1900 = sst [smem:[#allocation14_spill]] %s1929_s30  ;;  %s101_s11 = ssub.s32 %s1419_s24, %s1929_s30 }
  0x1b   : > { %s137_s12 = sadd.s32 1, %s1391_s17  ;;  %p42_p5 = scmp.ge.s32.totalorder %s1931_s5, 2 }
  0x1c   : > { %p147_p6 = scmp.ne.s32.totalorder %s1391_s17, %s1387_s16  ;;  %p148_p7 = scmp.eq.s32.totalorder %s1012_s27, 7 }
  0x1d   : > { %p153_p8 = scmp.ne.s32.totalorder %s1387_s16, %s1383_s15  ;;  %s1933_s5 = smov (%p42_p5, %s1931_s5), 0 }
  0x1e   : > { %1901 = sst [smem:[#allocation15_spill]] %s1933_s5  ;;  %p1551_p9 = por %p148_p7, %p147_p6 }
  0x1f   : > { %p154_p10 = scmp.eq.s32.totalorder %s1013_s28, 7  ;;  %s100_s14 = ssub.s32 %s1423_s25, %s1933_s5 }
  0x20   : > { %s1015_s8 = sshll.u32 %s1933_s5, 1  ;;  %s102_s6 = sor.u32 %s101_s11, %s100_s14 }
  0x21   : > { %s133_s29 = sadd.s32 %s1015_s8, %s1929_s30  ;;  %s104_s4 = sor.u32 %s103_s7, %s102_s6 }
  0x22   : > { %s134_s3 = ssub.s32 %s131_s10, %s133_s29  ;;  %p105_p11 = scmp.eq.s32.totalorder %s104_s4, 0 }
  0x23   : > { %p135_p12 = scmp.eq.s32.totalorder %s134_s3, 0  ;;  %p1559_p13 = por %p154_p10, %p153_p8 }
  0x24   : > { %s1904_s15 = sadd.s32 1, %s1399_s19  ;;  %p1019_p0 = scmp.ge.s32.totalorder %s1427_s26, 8 }
  0x25   : > { %s1566_s1 = scalar_select %p105_p11, %s1399_s19, %s1904_s15  }
  0x26   : > { %s1569_s0 = scalar_select %p135_p12, %s1391_s17, %s137_s12  }
  0x27   : > { %1905 = sst [smem:[#allocation16_spill]] %s1566_s1  ;;  %200 = sbr.rel (%p1019_p0) target bundleno = 65 (0x41), region = 16 }
  0x2e   : > { %227 = sbr.rel (!%p1534_p4) target bundleno = 65 (0x41), region = 28  ;;  %s229_s3 = sand.u32 (%p1534_p4), 1, %s1399_s19  }
  0x2f   : > { %s1047_s4 = sshll.u32 (%p1534_p4), %s1419_s24, 5  ;;  %s1020_s28 = sshll.u32 (%p1534_p4), %s229_s3, 7 }
  0x30   : > { %s234_s29 = sadd.s32 (%p1534_p4), %s1415_s23, %s1047_s4  ;;  %s1023_s6 = sshll.u32 (%p1534_p4), %s1423_s25, 6 }
  0x31   : > { %s236_s7 = sadd.s32 (%p1534_p4), %s1023_s6, %s234_s29  ;;  %s1906_s2 = sld [smem:[#allocation19_spill]] (%p1534_p4) }
  0x32   : > { %s1024_s15 = sshll.u32 (%p1534_p4), %s236_s7, 3  ;;  %s231_s9 = scalar_lea.vmem (%p1534_p4), [#allocation2], %s1020_s28 }
  0x37   : > { %s1581_s12 = scalar_lea.vmem %s1906_s2, %s1024_s15 }
  0x38   : > { %v296_v0 = vld [vmem:[%s1581_s12] sm:$0xff]  ;;  %v298_v1 = vld [vmem:[%s1581_s12 + $0x10] sm:$0xff] }
  0x39   : > { %v300_v2 = vld [vmem:[%s1581_s12 + $0x20] sm:$0xff]  ;;  %297 = vst [vmem:[%s231_s9] sm:$0xff] %v296_v0  ;;  %299 = vst [vmem:[%s231_s9 + $0x8] sm:$0xff] %v298_v1  ;;  %v302_v3 = vld [vmem:[%s1581_s12 + $0x30] sm:$0xff] }
  0x3a   : > { %301 = vst [vmem:[%s231_s9 + $0x10] sm:$0xff] %v300_v2  ;;  %v304_v4 = vld [vmem:[%s1581_s12 + $0x40] sm:$0xff]  ;;  %v306_v5 = vld [vmem:[%s1581_s12 + $0x50] sm:$0xff]  ;;  %303 = vst [vmem:[%s231_s9 + $0x18] sm:$0xff] %v302_v3 }
  0x3b   : > { %305 = vst [vmem:[%s231_s9 + $0x20] sm:$0xff] %v304_v4  ;;  %307 = vst [vmem:[%s231_s9 + $0x28] sm:$0xff] %v306_v5  ;;  %v308_v6 = vld [vmem:[%s1581_s12 + $0x60] sm:$0xff]  ;;  %v310_v7 = vld [vmem:[%s1581_s12 + $0x70] sm:$0xff] }
  0x3c   : > { %v312_v8 = vld [vmem:[%s1581_s12 + $0x80] sm:$0xff]  ;;  %309 = vst [vmem:[%s231_s9 + $0x30] sm:$0xff] %v308_v6  ;;  %311 = vst [vmem:[%s231_s9 + $0x38] sm:$0xff] %v310_v7  ;;  %v314_v9 = vld [vmem:[%s1581_s12 + $0x90] sm:$0xff] }
  0x3d   : > { %313 = vst [vmem:[%s231_s9 + $0x40] sm:$0xff] %v312_v8  ;;  %v316_v10 = vld [vmem:[%s1581_s12 + $0xa0] sm:$0xff]  ;;  %v318_v11 = vld [vmem:[%s1581_s12 + $0xb0] sm:$0xff]  ;;  %315 = vst [vmem:[%s231_s9 + $0x48] sm:$0xff] %v314_v9 }
  0x3e   : > { %317 = vst [vmem:[%s231_s9 + $0x50] sm:$0xff] %v316_v10  ;;  %319 = vst [vmem:[%s231_s9 + $0x58] sm:$0xff] %v318_v11  ;;  %v320_v12 = vld [vmem:[%s1581_s12 + $0xc0] sm:$0xff]  ;;  %v322_v13 = vld [vmem:[%s1581_s12 + $0xd0] sm:$0xff] }
  0x3f   : > { %v324_v14 = vld [vmem:[%s1581_s12 + $0xe0] sm:$0xff]  ;;  %321 = vst [vmem:[%s231_s9 + $0x60] sm:$0xff] %v320_v12  ;;  %323 = vst [vmem:[%s231_s9 + $0x68] sm:$0xff] %v322_v13  ;;  %v326_v15 = vld [vmem:[%s1581_s12 + $0xf0] sm:$0xff] }
  0x40   : > { %325 = vst [vmem:[%s231_s9 + $0x70] sm:$0xff] %v324_v14  ;;  %327 = vst [vmem:[%s231_s9 + $0x78] sm:$0xff] %v326_v15 }
  0x41 PF: > { %p1025_p1 = scmp.ge.s32.totalorder %s1427_s26, 1  ;;  %p332_p2 = scmp.lt.s32.totalorder %s1427_s26, 9 }
  0x43   : > { %p333_p3 = pnand %p1025_p1, %p332_p2 }
  0x44   : > { %s339_s14 = sand.u32 (!%p333_p3), 1, %s1395_s18   ;;  %s1603_s8 = sand.u32 (!%p333_p3), 1, %s1387_s16  }
  0x45   : > { %336 = sbr.rel (%p333_p3) target bundleno = 751 (0x2ef), region = 66  ;;  %s1026_s3 = sshll.u32 (!%p333_p3), %s339_s14, 7 }
  0x46   : > { %s1027_s4 = sshll.u32 (!%p333_p3), %s1407_s21, 4  ;;  %p385_p4 = scmp.lt.s32.totalorder (!%p333_p3), %s1411_s22, 1 }
  0x47   : > { %p387_p5 = scmp.lt.s32.totalorder (!%p333_p3), %s1027_s4, 31  ;;  %p396_p6 = scmp.lt.s32.totalorder (!%p333_p3), %s1403_s20, 1 }
  0x48   : > { %s1907_s11 = sld [smem:[#allocation17_spill]] (!%p333_p3)  ;;  %s1908_s25 = sld [smem:[#allocation18_spill]] (!%p333_p3) }
  0x49   : > { %s1620_s23 = scalar_lea.vmem (!%p333_p3), [#allocation2], %s1026_s3  ;;  %s1623_s1 = scalar_lea.vmem (!%p333_p3), [#allocation3], %s1603_s8 }
  0x4a   : > { %p1032_p7 = scmp.ne.s32.totalorder (!%p333_p3), %s1403_s20, 0 }
  0x4c   : > { %s386_s28 = scalar_select %p385_p4, %s1411_s22, 1 }
  0x4d   : > { %s1935_s4 = smov (!%p387_p5, %s1027_s4), 31  ;;  %v1429_v16 = vmov (!%p1032_p7), 0.0   ;;  %v1430_v17 = vmov (!%p1032_p7), 0  }
  0x4e   : > { %s1028_s29 = sshll.u32 %s386_s28, 5  ;;  %s1030_s18 = sshll.u32 %s386_s28, 1  ;;  %412 = vst [vmem:[%s1623_s1] sm:$0x1] (!%p1032_p7), %v1429_v16 }
  0x4f   : > { %s390_s6 = sadd.s32 %s1028_s29, %s1935_s4  ;;  %s1626_s4 = scalar_lea.vmem [#allocation5], %s1603_s8 }
  0x50   : > { %s1029_s7 = sshll.u32 %s390_s6, 2  ;;  %411 = sbr.rel (%p1032_p7) target bundleno = 87 (0x57), region = 74  ;;  %413 = vst [vmem:[%s1626_s4] sm:$0x1] (!%p1032_p7), %v1430_v17 }
  0x51   : > { %s1612_s12 = scalar_lea.vmem %s1907_s11, %s1029_s7 }
  0x52   : > { %s397_s9 = scalar_select %p396_p6, %s1403_s20, 1 }
  0x54   : > { %s399_s2 = sadd.s32 %s1030_s18, %s397_s9 }
  0x55   : > { %s1031_s14 = sshll.u32 %s399_s2, 1 }
  0x56   : > { %s1618_s24 = scalar_lea.vmem %s1908_s25, %s1031_s14 }
  0x57 PF: > { %v1080_v18 = vld [vmem:[%s1612_s12 + $0x8] sm:$0xff]   ;;  %v1049_v19 = vld [vmem:[%s1612_s12] sm:$0xff]   ;;  %v1081_v20 = vld [vmem:[%s1612_s12 + $0x10] sm:$0xff]   ;;  %vm496_vm0 = vcmask 31744   ;;  %vm578_vm1 = vcmask 1043456   ;;  %vm638_vm2 = vcmask 1041408  }
  0x58   : > { %v1634_v21 = vunpack.c.l.bf16 %v1080_v18  ;;  %v1636_v22 = vunpack.c.l.bf16 %v1049_v19  ;;  %v1638_v23 = vunpack.c.h.bf16 %v1080_v18  ;;  %v1640_v24 = vunpack.c.h.bf16 %v1049_v19  ;;  %v1082_v31 = vld [vmem:[%s1612_s12 + $0x18] sm:$0xff]   ;;  %v446_v40 = vld [vmem:[%s1618_s24] sm:$0x3]  ;;  %v1084_v49 = vld [vmem:[%s1612_s12 + $0x28] sm:$0xff]   ;;  %s1041_s2 = sshll.u32 %s1411_s22, 1  ;;  %s847_s24 = sshll.u32 %s1623_s1, 4  ;;  %s1774_s24 = int_to_ptr.vmem [resolvable:$true] %s847_s24 }
  0x59   : > { %v1642_v25 = vunpack.c.h.bf16 %v1081_v20  ;;  %v1644_v26 = vunpack.c.l.bf16 %v1081_v20  ;;  %v1657_v34 = vunpack.c.h.bf16 %v1082_v31  ;;  %v1659_v35 = vunpack.c.l.bf16 %v1082_v31  ;;  %v1083_v41 = vld [vmem:[%s1612_s12 + $0x20] sm:$0xff]   ;;  %v1085_v57 = vld [vmem:[%s1612_s12 + $0x30] sm:$0xff]   ;;  %v1086_v3 = vld [vmem:[%s1612_s12 + $0x38] sm:$0xff]   ;;  %s1762_s20 = sadd.s32 %s1407_s21, %s1041_s2  ;;  %s1909_s28 = sld [smem:[#allocation20_spill]] }
  0x5a   : > { %v482_v27 = vmul.f32 %v1634_v21, %v1634_v21  ;;  %v480_v28 = vmul.f32 %v1636_v22, %v1636_v22  ;;  %v483_v29 = vmul.f32 %v1638_v23, %v1638_v23  ;;  %v481_v30 = vmul.f32 %v1640_v24, %v1640_v24  ;;  %s862_s21 = sshll.u32 %s1626_s4, 4  ;;  %s829_s22 = scalar_lea.sflag [#allocation4], %s1603_s8  ;;  %s1810_s21 = int_to_ptr.vmem [resolvable:$true] %s862_s21 }
  0x5b   : > { %v485_v38 = vmul.f32 %v1642_v25, %v1642_v25  ;;  %v484_v39 = vmul.f32 %v1644_v26, %v1644_v26  ;;  %v487_v42 = vmul.f32 %v1657_v34, %v1657_v34  ;;  %v486_v43 = vmul.f32 %v1659_v35, %v1659_v35  ;;  %s1269_s6 = scalar_lea.vmem %s1774_s24, 16  ;;  %s1432_s7 = smov [#allocation3]  }
  0x5c   : > { %v503_v32 = vsel %vm496_vm0, %v482_v27, 0.0  ;;  %v497_v33 = vsel %vm496_vm0, %v480_v28, 0.0  ;;  %v506_v36 = vsel %vm496_vm0, %v483_v29, 0.0  ;;  %v500_v37 = vsel %vm496_vm0, %v481_v30, 0.0  ;;  %p1270_p8 = scmp.ne.s32.totalorder %s1774_s24, %s1269_s6  ;;  %s1273_s15 = sshll.u32 %s1432_s7, 4  ;;  %s1274_s15 = int_to_ptr.vmem [resolvable:$false] %s1273_s15 }
  0x5d   : > { %504 = vadd.xlane.f32.xlu1 %v503_v32  ;;  %498 = vadd.xlane.f32.xlu0 %v497_v33  ;;  %v447_v44 = vunpack.c.l.bf16 %v446_v40  ;;  %v512_v45 = vsel %vm496_vm0, %v485_v38, 0.0  ;;  %v509_v46 = vsel %vm496_vm0, %v484_v39, 0.0  ;;  %v1675_v47 = vunpack.c.h.bf16 %v1083_v41  ;;  %s1275_s10 = scalar_lea.vmem %s1274_s15, 32  ;;  %p1276_p12 = scmp.lt.s32.totalorder %s1774_s24, %s1274_s15 }
  0x5e   : > { %v1677_v48 = vunpack.c.l.bf16 %v1083_v41  ;;  %v518_v51 = vsel %vm496_vm0, %v487_v42, 0.0  ;;  %v515_v52 = vsel %vm496_vm0, %v486_v43, 0.0  ;;  %v1682_v53 = vunpack.c.h.bf16 %v1084_v49  ;;  %p1271_p10 = pnand %p1270_p8, %p1551_p9  ;;  %p1277_p0 = scmp.lt.s32.totalorder %s1275_s10, %s1269_s6 }
  0x5f   : > { %v577_v50 = vmul.f32 %v447_v44, %v447_v44  ;;  %v489_v54 = vmul.f32 %v1675_v47, %v1675_v47  ;;  %v1688_v56 = vunpack.c.l.bf16 %v1084_v49  ;;  %v1691_v60 = vunpack.c.h.bf16 %v1085_v57 }
  0x60   : > { %v488_v55 = vmul.f32 %v1677_v48, %v1677_v48  ;;  %v1693_v61 = vunpack.c.l.bf16 %v1085_v57  ;;  %v491_v1 = vmul.f32 %v1682_v53, %v1682_v53  ;;  %v1702_v5 = vunpack.c.h.bf16 %v1086_v3  ;;  %p1272_p11 = pneg %p1271_p10  ;;  %p1278_p1 = por %p1277_p0, %p1276_p12 }
  0x61   : > { %507 = vadd.xlane.f32.xlu1 %v506_v36  ;;  %501 = vadd.xlane.f32.xlu0 %v500_v37  ;;  %v579_v58 = vsel %vm578_vm1, %v577_v50, 0.0  ;;  %v524_v63 = vsel %vm496_vm0, %v489_v54, 0.0  ;;  %v490_v2 = vmul.f32 %v1688_v56, %v1688_v56  ;;  %v1704_v6 = vunpack.c.l.bf16 %v1086_v3 }
  0x62   : > { %v580_v59 = vrot.slane %v579_v58, 4  ;;  %v521_v0 = vsel %vm496_vm0, %v488_v55, 0.0  ;;  %v530_v8 = vsel %vm496_vm0, %v491_v1, 0.0  ;;  %v493_v10 = vmul.f32 %v1691_v60, %v1691_v60  ;;  %p1279_p2 = pnand %p1278_p1, %p1272_p11 }
  0x63   : > { %v527_v9 = vsel %vm496_vm0, %v490_v2, 0.0  ;;  %v492_v11 = vmul.f32 %v1693_v61, %v1693_v61  ;;  %v495_v16 = vmul.f32 %v1702_v5, %v1702_v5  ;;  %v494_v17 = vmul.f32 %v1704_v6, %v1704_v6 }
  0x64   : > { %v581_v62 = vadd.f32 %v580_v59, %v579_v58  ;;  %v536_v14 = vsel %vm496_vm0, %v493_v10, 0.0 }
  0x65   : > { %513 = vadd.xlane.f32.xlu1 %v512_v45  ;;  %510 = vadd.xlane.f32.xlu0 %v509_v46  ;;  %v533_v15 = vsel %vm496_vm0, %v492_v11, 0.0  ;;  %v542_v18 = vsel %vm496_vm0, %v495_v16, 0.0  ;;  %v539_v19 = vsel %vm496_vm0, %v494_v17, 0.0 }
  0x66   : > { %v582_v4 = vrot.slane %v581_v62, 2 }
  0x68   : > { %v583_v7 = vadd.f32 %v582_v4, %v581_v62 }
  0x69   : > { %519 = vadd.xlane.f32.xlu1 %v518_v51  ;;  %516 = vadd.xlane.f32.xlu0 %v515_v52 }
  0x6a   : > { %v584_v12 = vrot.slane %v583_v7, 1 }
  0x6c   : > { %v585_v13 = vadd.f32 %v584_v12, %v583_v7 }
  0x6d   : > { %525 = vadd.xlane.f32.xlu1 %v524_v63  ;;  %522 = vadd.xlane.f32.xlu0 %v521_v0 }
  0x6e   : > { %1235 = vrsqrt.f32 %v585_v13 }
  0x71   : > { %531 = vadd.xlane.f32.xlu1 %v530_v8  ;;  %528 = vadd.xlane.f32.xlu0 %v527_v9 }
  0x75   : > { %537 = vadd.xlane.f32.xlu1 %v536_v14  ;;  %534 = vadd.xlane.f32.xlu0 %v533_v15 }
  0x78   : > { %v1236_v20 = vpop.eup %1235 }
  0x79   : > { %543 = vadd.xlane.f32.xlu1 %v542_v18  ;;  %540 = vadd.xlane.f32.xlu0 %v539_v19  ;;  %v587_v27 = vmin.f32 %v1236_v20, 10000.0 }
  0x7b   : > { %v612_v28 = vmul.f32 %v587_v27, %v447_v44 }
  0x7d   : > { %v613_v29 = vpack.c.bf16 %v612_v28, %v612_v28 }
  0x7f   : > { %1116 = vmatprep.subr.msk.bf16.mxu0 %vm638_vm2, %v613_v29  ;;  %v640_v30 = vsel %vm638_vm2, %v613_v29, 0  ;;  %1117 = vmatprep.subr.msk.bf16.mxu1 %vm638_vm2, %v613_v29 }
  0x80   : > { %1097 = vmatpush3.bf16.msra.mxu0 %v640_v30  ;;  %1115 = vmatpush3.bf16.msra.mxu1 %v640_v30 }
  0xea   : > { %v505_v31 = vpop.xlane.xlu1 %504  ;;  %v499_v32 = vpop.xlane.xlu0 %498 }
  0xeb   : > { %1237 = vrsqrt.f32 %v505_v31 }
  0xec   : > { %1239 = vrsqrt.f32 %v499_v32 }
  0xee   : > { %v508_v33 = vpop.xlane.xlu1 %507  ;;  %v502_v36 = vpop.xlane.xlu0 %501 }
  0xef   : > { %1241 = vrsqrt.f32 %v508_v33 }
  0xf0   : > { %1243 = vrsqrt.f32 %v502_v36 }
  0xf2   : > { %v514_v37 = vpop.xlane.xlu1 %513  ;;  %v511_v38 = vpop.xlane.xlu0 %510 }
  0xf3   : > { %1245 = vrsqrt.f32 %v514_v37 }
  0xf4   : > { %1247 = vrsqrt.f32 %v511_v38 }
  0xf5   : > { %v1238_v39 = vpop.eup %1237 }
  0xf6   : > { %v1240_v40 = vpop.eup %1239  ;;  %v520_v41 = vpop.xlane.xlu1 %519  ;;  %v563_v43 = vmin.f32 %v1238_v39, 10000.0 }
  0xf7   : > { %v517_v42 = vpop.xlane.xlu0 %516  ;;  %1249 = vrsqrt.f32 %v520_v41  ;;  %v561_v45 = vmin.f32 %v1240_v40, 10000.0 }
  0xf8   : > { %1251 = vrsqrt.f32 %v517_v42  ;;  %v590_v54 = vmul.f32 %v1634_v21, %v563_v43 }
  0xf9   : > { %v1242_v44 = vpop.eup %1241  ;;  %v588_v58 = vmul.f32 %v1636_v22, %v561_v45  ;;  %v449_v45 = vld [vmem:[%s1620_s23 + $0x8] sm:$0xff] }
  0xfa   : > { %v1244_v46 = vpop.eup %1243  ;;  %v564_v49 = vmin.f32 %v1242_v44, 10000.0  ;;  %v526_v50 = vpop.xlane.xlu1 %525  ;;  %vm465_vm5 = vcmp.ne.s32.totalorder %v449_v45, 0 }
  0xfb   : > { %v523_v51 = vpop.xlane.xlu0 %522  ;;  %v562_v52 = vmin.f32 %v1244_v46, 10000.0  ;;  %1253 = vrsqrt.f32 %v526_v50  ;;  %v1431_v46 = vmov 0.0  }
  0xfc   : > { %v591_v55 = vmul.f32 %v1638_v23, %v564_v49  ;;  %1255 = vrsqrt.f32 %v523_v51  ;;  %v740_v50 = vsel %vm465_vm5, 1.0, %v1431_v46  ;;  %v451_v51 = vld [vmem:[%s1620_s23 + $0x18] sm:$0xff] }
  0xfd   : > { %v1246_v57 = vpop.eup %1245  ;;  %v589_v59 = vmul.f32 %v1640_v24, %v562_v52  ;;  %vm467_vm6 = vcmp.ne.s32.totalorder %v451_v51, 0 }
  0xfe   : > { %v1248_v62 = vpop.eup %1247  ;;  %v605_v63 = vpack.c.bf16 %v591_v55, %v590_v54  ;;  %v566_v0 = vmin.f32 %v1246_v57, 10000.0  ;;  %v532_v1 = vpop.xlane.xlu1 %531  ;;  %v742_v52 = vsel %vm467_vm6, 1.0, %v1431_v46  ;;  %v452_v55 = vld [vmem:[%s1620_s23 + $0x20] sm:$0xff] }
  0xff   : > { %v529_v2 = vpop.xlane.xlu0 %528  ;;  %v565_v3 = vmin.f32 %v1248_v62, 10000.0  ;;  %1257 = vrsqrt.f32 %v532_v1  ;;  %v604_v4 = vpack.c.bf16 %v589_v59, %v588_v58  ;;  %vm468_vm7 = vcmp.ne.s32.totalorder %v452_v55, 0  ;;  %v453_v59 = vld [vmem:[%s1620_s23 + $0x28] sm:$0xff]  ;;  %v454_v62 = vld [vmem:[%s1620_s23 + $0x30] sm:$0xff] }
 0x100   : > { %v593_v7 = vmul.f32 %v1642_v25, %v566_v0  ;;  %1259 = vrsqrt.f32 %v529_v2  ;;  %v743_v58 = vsel %vm468_vm7, 1.0, %v1431_v46  ;;  %vm469_vm8 = vcmp.ne.s32.totalorder %v453_v59, 0  ;;  %v455_v2 = vld [vmem:[%s1620_s23 + $0x38] sm:$0xff] }
 0x101   : > { %v1250_v21 = vpop.eup %1249  ;;  %v592_v23 = vmul.f32 %v1644_v26, %v565_v3  ;;  %1098 = vmatprep.mubr.msk.bf16.mxu0 %vm496_vm0, %v604_v4  ;;  %vm470_vm9 = vcmp.ne.s32.totalorder %v454_v62, 0  ;;  %v744_v0 = vsel %vm469_vm8, 1.0, %v1431_v46  ;;  %vm471_vm10 = vcmp.ne.s32.totalorder %v455_v2, 0 }
 0x102   : > { %v1252_v8 = vpop.eup %1251  ;;  %v568_v22 = vmin.f32 %v1250_v21, 10000.0  ;;  %1099 = vmatmul.mubr.msk.bf16.vlgmr.msra.gmra.mrb[0].mxu0 %vm496_vm0, %v605_v63  ;;  %v538_v24 = vpop.xlane.xlu1 %537  ;;  %v745_v1 = vsel %vm470_vm9, 1.0, %v1431_v46  ;;  %v746_v4 = vsel %vm471_vm10, 1.0, %v1431_v46  ;;  %v456_v21 = vld [vmem:[%s1620_s23 + $0x40] sm:$0xff] }
 0x103   : > { %v535_v9 = vpop.xlane.xlu0 %534  ;;  %v606_v10 = vpack.c.bf16 %v593_v7, %v592_v23  ;;  %v567_v11 = vmin.f32 %v1252_v8, 10000.0  ;;  %1261 = vrsqrt.f32 %v538_v24  ;;  %vm472_vm11 = vcmp.ne.s32.totalorder %v456_v21, 0  ;;  %v458_v24 = vld [vmem:[%s1620_s23 + $0x50] sm:$0xff] }
 0x104   : > { %v595_v12 = vmul.f32 %v1657_v34, %v568_v22  ;;  %1263 = vrsqrt.f32 %v535_v9  ;;  %v747_v8 = vsel %vm472_vm11, 1.0, %v1431_v46  ;;  %v457_v22 = vld [vmem:[%s1620_s23 + $0x48] sm:$0xff]  ;;  %vm474_vm13 = vcmp.ne.s32.totalorder %v458_v24, 0 }
 0x105   : > { %v1254_v13 = vpop.eup %1253  ;;  %v594_v25 = vmul.f32 %v1659_v35, %v567_v11  ;;  %1102 = vmatprep.mubr.msk.bf16.mxu0 %vm496_vm0, %v606_v10  ;;  %vm473_vm12 = vcmp.ne.s32.totalorder %v457_v22, 0  ;;  %v459_v10 = vld [vmem:[%s1620_s23 + $0x58] sm:$0xff] }
 0x106   : > { %v1256_v26 = vpop.eup %1255  ;;  %v570_v14 = vmin.f32 %v1254_v13, 10000.0  ;;  %v544_v15 = vpop.xlane.xlu1 %543  ;;  %v748_v11 = vsel %vm473_vm12, 1.0, %v1431_v46  ;;  %vm475_vm14 = vcmp.ne.s32.totalorder %v459_v10, 0 }
 0x107   : > { %v541_v16 = vpop.xlane.xlu0 %540  ;;  %v607_v17 = vpack.c.bf16 %v595_v12, %v594_v25  ;;  %v569_v18 = vmin.f32 %v1256_v26, 10000.0  ;;  %1265 = vrsqrt.f32 %v544_v15  ;;  %v749_v12 = vsel %vm474_vm13, 1.0, %v1431_v46 }
 0x108   : > { %1267 = vrsqrt.f32 %v541_v16  ;;  %v597_v19 = vmul.f32 %v1675_v47, %v570_v14  ;;  %v750_v26 = vsel %vm475_vm14, 1.0, %v1431_v46  ;;  %v460_v14 = vld [vmem:[%s1620_s23 + $0x60] sm:$0xff] }
 0x109   : > { %v1258_v20 = vpop.eup %1257  ;;  %v596_v27 = vmul.f32 %v1677_v48, %v569_v18  ;;  %vm476_vm15 = vcmp.ne.s32.totalorder %v460_v14, 0  ;;  %v462_v18 = vld [vmem:[%s1620_s23 + $0x70] sm:$0xff] }
 0x10a   : > { %v1260_v34 = vpop.eup %1259  ;;  %v572_v28 = vmin.f32 %v1258_v20, 10000.0  ;;  %1103 = vmatmul.mubr.msk.bf16.gmra.mrb[4].mxu0 %vm496_vm0, %v607_v17  ;;  %v751_v16 = vsel %vm476_vm15, 1.0, %v1431_v46  ;;  %v461_v17 = vld [vmem:[%s1620_s23 + $0x68] sm:$0xff]  ;;  %vm478_vm1 = vcmp.ne.s32.totalorder %v462_v18, 0  ;;  %v463_v20 = vld [vmem:[%s1620_s23 + $0x78] sm:$0xff] }
 0x10b   : > { %v571_v35 = vmin.f32 %v1260_v34, 10000.0  ;;  %v608_v29 = vpack.c.bf16 %v597_v19, %v596_v27  ;;  %v753_v34 = vsel %vm478_vm1, 1.0, %v1431_v46  ;;  %vm479_vm2 = vcmp.ne.s32.totalorder %v463_v20, 0 }
 0x10c   : > { %v599_v30 = vmul.f32 %v1682_v53, %v572_v28 }
 0x10d   : > { %v1262_v31 = vpop.eup %1261  ;;  %v598_v32 = vmul.f32 %v1688_v56, %v571_v35  ;;  %1106 = vmatprep.mubr.msk.bf16.mxu1 %vm496_vm0, %v608_v29  ;;  %v754_v29 = vsel %vm479_vm2, 1.0, %v1431_v46 }
 0x10e   : > { %v1264_v33 = vpop.eup %1263  ;;  %v574_v36 = vmin.f32 %v1262_v31, 10000.0 }
 0x10f   : > { %v609_v47 = vpack.c.bf16 %v599_v30, %v598_v32  ;;  %v573_v37 = vmin.f32 %v1264_v33, 10000.0 }
 0x110   : > { %v601_v48 = vmul.f32 %v1691_v60, %v574_v36  ;;  %v450_v60 = vld [vmem:[%s1620_s23 + $0x10] sm:$0xff] }
 0x111   : > { %v1266_v38 = vpop.eup %1265  ;;  %v600_v39 = vmul.f32 %v1693_v61, %v573_v37  ;;  %1107 = vmatmul.mubr.msk.bf16.vlgmr.msra.gmra.mrb[0].mxu1 %vm496_vm0, %v609_v47  ;;  %vm466_vm3 = vcmp.ne.s32.totalorder %v450_v60, 0  ;;  %v448_v61 = vld [vmem:[%s1620_s23] sm:$0xff]  ;;  %s1042_s23 = sshll.u32 %s1762_s20, 4 }
 0x112   : > { %v1268_v53 = vpop.eup %1267  ;;  %v576_v40 = vmin.f32 %v1266_v38, 10000.0  ;;  %vm464_vm4 = vcmp.ne.s32.totalorder %v448_v61, 0  ;;  %s1772_s29 = scalar_lea.hbm %s1909_s28, %s1042_s23 }
 0x113   : > { %v610_v41 = vpack.c.bf16 %v601_v48, %v600_v39  ;;  %v575_v56 = vmin.f32 %v1268_v53, 10000.0  ;;  %v739_v49 = vsel %vm464_vm4, 1.0, %v1431_v46 }
 0x114   : > { %v603_v42 = vmul.f32 %v1702_v5, %v576_v40  ;;  %v741_v5 = vsel %vm466_vm3, 1.0, %v1431_v46 }
 0x115   : > { %v602_v43 = vmul.f32 %v1704_v6, %v575_v56  ;;  %1110 = vmatprep.mubr.msk.bf16.mxu1 %vm496_vm0, %v610_v41  ;;  %v795_v6 = vadd.f32 %v740_v50, %v739_v49 }
 0x117   : > { %v611_v44 = vpack.c.bf16 %v603_v42, %v602_v43  ;;  %v796_v54 = vadd.f32 %v795_v6, %v741_v5 }
 0x119   : > { %1111 = vmatmul.mubr.msk.bf16.gmra.mrb[4].mxu1 %vm496_vm0, %v611_v44  ;;  %v797_v57 = vadd.f32 %v796_v54, %v742_v52  ;;  %vm477_vm0 = vcmp.ne.s32.totalorder %v461_v17, 0 }
 0x11a   : > { %v752_v27 = vsel %vm477_vm0, 1.0, %v1431_v46 }
 0x11b   : > { %v798_v63 = vadd.f32 %v797_v57, %v743_v58 }
 0x11d   : > { %v799_v3 = vadd.f32 %v798_v63, %v744_v0 }
 0x11f   : > { %v800_v7 = vadd.f32 %v799_v3, %v745_v1 }
 0x121   : > { %v801_v23 = vadd.f32 %v800_v7, %v746_v4 }
 0x123   : > { %v802_v9 = vadd.f32 %v801_v23, %v747_v8 }
 0x125   : > { %v803_v13 = vadd.f32 %v802_v9, %v748_v11 }
 0x127   : > { %v804_v25 = vadd.f32 %v803_v13, %v749_v12 }
 0x129   : > { %v805_v15 = vadd.f32 %v804_v25, %v750_v26 }
 0x12b   : > { %v806_v19 = vadd.f32 %v805_v15, %v751_v16 }
 0x12d   : > { %v807_v28 = vadd.f32 %v806_v19, %v752_v27 }
 0x12f   : > { %v808_v35 = vadd.f32 %v807_v28, %v753_v34 }
 0x131   : > { %v809_v30 = vadd.f32 %v808_v35, %v754_v29  ;;  %v819_v35 = vld [vmem:[%s1623_s1] sm:$0x1] }
 0x133   : > { %810 = vadd.xlane.f32.xlu1 %v809_v30 }
 0x1d5   : > { %v1100_v31 = vpop.f32.mrb[0].mxu0 }
 0x1d6   : > { %v676_v32 = vpop.f32.mrb[1].mxu0  ;;  %v757_v48 = vmul.f32 %v1100_v31, %v741_v5 }
 0x1d7   : > { %v1101_v33 = vpop.f32.mrb[2].mxu0  ;;  %v755_v47 = vmul.f32 %v739_v49, %v676_v32 }
 0x1d8   : > { %v679_v36 = vpop.f32.mrb[3].mxu0  ;;  %v758_v39 = vmul.f32 %v1101_v33, %v742_v52  ;;  %v823_v33 = vld [vmem:[%s1626_s4] sm:$0x1] }
 0x1d9   : > { %v756_v37 = vmul.f32 %v740_v50, %v679_v36 }
 0x1db   : > { %v771_v38 = vadd.f32 %v756_v37, %v755_v47 }
 0x1dd   : > { %v772_v53 = vadd.f32 %v771_v38, %v757_v48  ;;  %v1104_v40 = vpop.f32.mrb[4].mxu0 }
 0x1de   : > { %v692_v41 = vpop.f32.mrb[5].mxu0  ;;  %v761_v45 = vmul.f32 %v1104_v40, %v745_v1 }
 0x1df   : > { %v759_v56 = vmul.f32 %v743_v58, %v692_v41  ;;  %v773_v42 = vadd.f32 %v772_v53, %v758_v39  ;;  %v1105_v43 = vpop.f32.mrb[6].mxu0 }
 0x1e0   : > { %v695_v44 = vpop.f32.mrb[7].mxu0  ;;  %v762_v6 = vmul.f32 %v1105_v43, %v746_v4 }
 0x1e1   : > { %v774_v60 = vadd.f32 %v773_v42, %v759_v56  ;;  %v760_v61 = vmul.f32 %v744_v0, %v695_v44 }
 0x1e3   : > { %v775_v46 = vadd.f32 %v774_v60, %v760_v61 }
 0x1e4   : > { %v1108_v51 = vpop.f32.mrb[0].mxu1 }
 0x1e5   : > { %v776_v54 = vadd.f32 %v775_v46, %v761_v45  ;;  %v708_v55 = vpop.f32.mrb[1].mxu1  ;;  %v765_v62 = vmul.f32 %v1108_v51, %v749_v12 }
 0x1e6   : > { %v763_v49 = vmul.f32 %v747_v8, %v708_v55  ;;  %v1109_v50 = vpop.f32.mrb[2].mxu1 }
 0x1e7   : > { %v777_v5 = vadd.f32 %v776_v54, %v762_v6  ;;  %v711_v57 = vpop.f32.mrb[3].mxu1  ;;  %v766_v2 = vmul.f32 %v1109_v50, %v750_v26 }
 0x1e8   : > { %v764_v52 = vmul.f32 %v748_v11, %v711_v57  ;;  %v811_v11 = vpop.xlane.xlu1 %810 }
 0x1e9   : > { %v778_v59 = vadd.f32 %v777_v5, %v763_v49  ;;  %v812_v12 = vrot.slane %v811_v11, 4 }
 0x1eb   : > { %v779_v63 = vadd.f32 %v778_v59, %v764_v52  ;;  %v813_v25 = vadd.f32 %v812_v12, %v811_v11 }
 0x1ec   : > { %v1112_v58 = vpop.f32.mrb[4].mxu1 }
 0x1ed   : > { %v780_v3 = vadd.f32 %v779_v63, %v765_v62  ;;  %v724_v7 = vpop.f32.mrb[5].mxu1  ;;  %v769_v24 = vmul.f32 %v1112_v58, %v753_v34  ;;  %v814_v26 = vrot.slane %v813_v25, 2 }
 0x1ee   : > { %v767_v21 = vmul.f32 %v751_v16, %v724_v7  ;;  %v1113_v0 = vpop.f32.mrb[6].mxu1 }
 0x1ef   : > { %v781_v1 = vadd.f32 %v780_v3, %v766_v2  ;;  %v727_v23 = vpop.f32.mrb[7].mxu1  ;;  %v770_v8 = vmul.f32 %v1113_v0, %v754_v29  ;;  %v815_v17 = vadd.f32 %v814_v26, %v813_v25 }
 0x1f0   : > { %v768_v22 = vmul.f32 %v752_v27, %v727_v23 }
 0x1f1   : > { %v782_v4 = vadd.f32 %v781_v1, %v767_v21  ;;  %v816_v20 = vrot.slane %v815_v17, 1 }
 0x1f3   : > { %v783_v9 = vadd.f32 %v782_v4, %v768_v22  ;;  %v817_v28 = vadd.f32 %v816_v20, %v815_v17 }
 0x1f5   : > { %v784_v10 = vadd.f32 %v783_v9, %v769_v24 }
 0x1f7   : > { %v785_v13 = vadd.f32 %v784_v10, %v770_v8 }
 0x1f9   : > { %786 = vadd.xlane.f32.xlu0 %v785_v13 }
 0x286   : > { %v787_v14 = vpop.xlane.xlu0 %786 }
 0x287   : > { %v788_v15 = vrot.slane %v787_v14, 4 }
 0x289   : > { %v789_v16 = vadd.f32 %v788_v15, %v787_v14 }
 0x28b   : > { %v790_v18 = vrot.slane %v789_v16, 2 }
 0x28d   : > { %v791_v19 = vadd.f32 %v790_v18, %v789_v16 }
 0x28f   : > { %v792_v27 = vrot.slane %v791_v19, 1 }
 0x291   : > { %v793_v34 = vadd.f32 %v792_v27, %v791_v19 }
 0x293   : > { %1118 = vpush %v793_v34 }
 0x294   : > { %1120 = vpush %v817_v28 }
 0x2c4   : > { %s1119_s25 = spop %1118 }
 0x2c5   : > { %v820_v29 = vstv %s1119_s25  ;;  %s1121_s30 = spop %1120 }
 0x2c6   : > { %v821_v30 = vadd.f32 %v820_v29, %v819_v35  ;;  %v824_v31 = vstv %s1121_s30 }
 0x2c7   : > { %v1122_v32 = vtrunc.f32 %v824_v31 }
 0x2c8   : > { %822 = vst [vmem:[%s1623_s1] sm:$0x1] %v821_v30 }
 0x2c9   : > { %v1123_v36 = vcvt.f32.s32 %v1122_v32 }
 0x2ca   : > { %1282 = shalt.err (!%p1279_p2)
}
 0x2cb   : > { %s1283_s1 = scalar_lea.hbm %s1772_s29, 16  ;;  %s1287_s18 = scalar_lea.hbm %s1909_s28, 64 }
 0x2cc   : > { %p1284_p3 = scmp.ne.s32.totalorder %s1772_s29, %s1283_s1  ;;  %p1288_p6 = scmp.lt.u32.totalorder %s1772_s29, %s1909_s28 }
 0x2cd   : > { %p1289_p7 = scmp.lt.u32.totalorder %s1287_s18, %s1283_s1  ;;  %p1291_p10 = scmp.lt.u32.totalorder %s1283_s1, %s1772_s29 }
 0x2ce   : > { %p1285_p4 = pnand %p1284_p3, %p1551_p9 }
 0x2cf   : > { %p1290_p8 = por %p1289_p7, %p1288_p6 }
 0x2d0   : > { %p1286_p5 = pneg %p1285_p4 }
 0x2d1   : > { %p1292_p11 = por %p1291_p10, %p1290_p8 }
 0x2d3   : > { %p1293_p12 = pnand %p1292_p11, %p1286_p5 }
 0x2d5   : > { %1296 = shalt.err (!%p1293_p12)
}
 0x2d6   : > { %1124 = dma.vmem_to_hbm [thread:$0]  (%p1551_p9), %s1774_s24, 16, %s1772_s29, %s829_s22   ;;  %v826_v47 = vadd.s32 %v1123_v36, %v823_v33 }
 0x2d7   : > { %s1910_s30 = sld [smem:[#allocation21_spill]]  ;;  %s833_s3 = scalar_lea.sflag [#allocation6], %s1603_s8 }
 0x2d8   : > { %827 = vst [vmem:[%s1626_s4] sm:$0x1] %v826_v47  ;;  %s1297_s6 = scalar_lea.vmem %s1810_s21, 16  ;;  %s1433_s24 = smov [#allocation5]  }
 0x2d9   : > { %p1298_p0 = scmp.ne.s32.totalorder %s1810_s21, %s1297_s6  ;;  %s1301_s20 = sshll.u32 %s1433_s24, 4  ;;  %s1302_s20 = int_to_ptr.vmem [resolvable:$false] %s1301_s20 }
 0x2da   : > { %s1303_s29 = scalar_lea.vmem %s1302_s20, 32  ;;  %p1304_p3 = scmp.lt.s32.totalorder %s1810_s21, %s1302_s20 }
 0x2db   : > { %p1299_p1 = pnand %p1298_p0, %p1551_p9  ;;  %p1305_p4 = scmp.lt.s32.totalorder %s1303_s29, %s1297_s6 }
 0x2dd   : > { %s1806_s5 = scalar_lea.hbm %s1910_s30, %s1042_s23  ;;  %p1300_p2 = pneg %p1299_p1 }
 0x2de   : > { %p1306_p5 = por %p1305_p4, %p1304_p3 }
 0x2e0   : > { %p1307_p6 = pnand %p1306_p5, %p1300_p2 }
 0x2e2   : > { %1310 = shalt.err (!%p1307_p6)
}
 0x2e3   : > { %s1311_s8 = scalar_lea.hbm %s1806_s5, 16  ;;  %s1315_s22 = scalar_lea.hbm %s1910_s30, 64 }
 0x2e4   : > { %p1312_p7 = scmp.ne.s32.totalorder %s1806_s5, %s1311_s8  ;;  %p1316_p11 = scmp.lt.u32.totalorder %s1806_s5, %s1910_s30 }
 0x2e5   : > { %p1317_p12 = scmp.lt.u32.totalorder %s1315_s22, %s1311_s8  ;;  %p1319_p1 = scmp.lt.u32.totalorder %s1311_s8, %s1806_s5 }
 0x2e6   : > { %p1313_p8 = pnand %p1312_p7, %p1551_p9 }
 0x2e7   : > { %p1318_p0 = por %p1317_p12, %p1316_p11 }
 0x2e8   : > { %p1314_p10 = pneg %p1313_p8 }
 0x2e9   : > { %p1320_p2 = por %p1319_p1, %p1318_p0 }
 0x2eb   : > { %p1321_p3 = pnand %p1320_p2, %p1314_p10 }
 0x2ed   : > { %1324 = shalt.err (!%p1321_p3)
}
 0x2ee   : > { %1125 = dma.vmem_to_hbm [thread:$0]  (%p1551_p9), %s1810_s21, 16, %s1806_s5, %s833_s3  }
 0x2ef PF: > { %s1911_s10 = sld [smem:[#allocation9_spill]]  ;;  %p1135_p4 = scmp.ge.s32.totalorder %s1427_s26, 2 }
 0x2f1   : > { %p1129_p5 = pnand %p1135_p4, %p1559_p13 }
 0x2f5   : > { %s874_s1 = sand.u32 1, %s1911_s10  }
 0x2f6   : > { %s875_s11 = scalar_lea.sflag [#allocation4], %s874_s1 }
 0x2f7   : > { %1374 = dma.done.wait (!%p1129_p5), %s875_s11, 16  }
 0x2f8   : > { %1376 = vsyncadd (!%p1129_p5), %s875_s11, 4294967280  ;;  %s883_s12 = scalar_lea.sflag [#allocation6], %s874_s1 }
 0x2f9   : > { %1378 = dma.done.wait (!%p1129_p5), %s883_s12, 16  }
 0x2fa   : > { %1380 = vsyncadd (!%p1129_p5), %s883_s12, 4294967280  ;;  %s21_s26 = sadd.s32 1, %s1427_s26   ;;  %s1912_s13 = sld [smem:[#allocation16_spill]] }
 0x2fb   : > { %p18_p6 = scmp.ge.s32.totalorder %s21_s26, 10   ;;  %s1913_s20 = sld [smem:[#allocation10_spill]] }
 0x2fc   : > { %s1914_s21 = sld [smem:[#allocation11_spill]]  ;;  %s1915_s22 = sld [smem:[#allocation12_spill]] }
 0x2fd   : > { %s1916_s23 = sld [smem:[#allocation13_spill]]  ;;  %s1917_s24 = sld [smem:[#allocation14_spill]] }
 0x2fe   : > { %s1918_s25 = sld [smem:[#allocation15_spill]]  ;;  %s1919_s15 = smov %s1387_s16 }
 0x2ff   : > { %s1920_s16 = smov %s1391_s17  ;;  %s1921_s17 = smov %s1569_s0 }
 0x300   : > { %s1922_s18 = smov %s1399_s19  ;;  %s1923_s19 = smov %s1912_s13 }
 0x301   :  { %20 = sbr.rel (!%p18_p6) target bundleno = 15 (0xf), region = 137 }
 0x308   :  { %887 = vsyncpa [#allocation4], 1 }
 0x309   :  { %889 = vsyncpa [#allocation4 + $0x1], 1 }
 0x30a   :  { %890 = vsyncpa [#allocation6], 1 }
 0x30b   :  { %892 = vsyncpa [#allocation6 + $0x1], 1 }

</bundles_post_ra>
